<compile_context>
chip_gen: v5e
topology: v5e:2x2
jax: 0.10.0
libtpu: 0.0.40
codegen_flags: <defaults>
</compile_context>

<pallas_src>
import jax
import jax.numpy as jnp
from jax.experimental import pallas as pl
from jax.experimental.pallas import tpu as pltpu

N_INPUTS = 4
N_ACTIONS = 2
H1, H2, H3 = 64, 128, 64

TRUNK = H3                    # lanes [0, 64)   : trunk output (forward())
_VAL_OFF = TRUNK + N_ACTIONS  # lanes [64, 66)  : action probs, lane 66: value
OUT_W = 128                   # packed lane-dense output width (61 pad lanes)


def _fused_kernel(x_ref, w1_ref, b1_ref, w2_ref, b2_ref, w3_ref, b3_ref,
                  wh_ref, bh_ref, o_ref):
    # Layer 1: K=4 is pure MXU latency anyway; keep it f32 (tiny).
    h = jnp.dot(x_ref[...], w1_ref[...],
                preferred_element_type=jnp.float32) + b1_ref[...]
    h = jnp.maximum(h, 0.0)
    # Layers 2/3: bf16 MXU inputs, f32 accumulation, f32 epilogue.
    h = jnp.dot(h.astype(jnp.bfloat16), w2_ref[...],
                preferred_element_type=jnp.float32) + b2_ref[...]
    h = jnp.maximum(h, 0.0)
    h = jnp.dot(h.astype(jnp.bfloat16), w3_ref[...],
                preferred_element_type=jnp.float32) + b3_ref[...]
    h = jnp.maximum(h, 0.0)
    # Fused heads + trunk pass-through: wh = [I_64 | actor | critic | 0].
    # Kept in f32 so the trunk is passed through exactly and logits/value are
    # not re-quantized (64x128 matmul is negligible).
    slab = jnp.dot(h, wh_ref[...],
                   preferred_element_type=jnp.float32) + bh_ref[...]
    # In-place softmax over the two actor-logit lanes (exact f32 epilogue).
    lane = jax.lax.broadcasted_iota(jnp.int32, slab.shape, 1)
    is_logit = jnp.logical_and(lane >= TRUNK, lane < _VAL_OFF)
    masked = jnp.where(is_logit, slab, -1e30)
    m = jnp.max(masked, axis=-1, keepdims=True)
    e = jnp.where(is_logit, jnp.exp(masked - m), 0.0)
    denom = jnp.sum(e, axis=-1, keepdims=True)
    probs = e / denom
    o_ref[...] = jnp.where(is_logit, probs, slab).astype(o_ref.dtype)


def prepare_params(params):
    """Pack params for the kernel: bf16 trunk weights + combined f32 head matrix."""
    w1, b1, w2, b2, w3, b3, wa, ba, wc, bc = params
    wh = jnp.zeros((H3, OUT_W), jnp.float32)
    wh = wh.at[:, :TRUNK].set(jnp.eye(H3, dtype=jnp.float32))     # trunk pass-through
    wh = wh.at[:, TRUNK:_VAL_OFF].set(wa)                          # actor logits
    wh = wh.at[:, _VAL_OFF:_VAL_OFF + 1].set(wc)                   # critic value
    bh = jnp.zeros((1, OUT_W), jnp.float32)
    bh = bh.at[:, TRUNK:_VAL_OFF].set(ba)
    bh = bh.at[:, _VAL_OFF:_VAL_OFF + 1].set(bc)
    return (w1, b1,
            w2.astype(jnp.bfloat16), b2,
            w3.astype(jnp.bfloat16), b3,
            wh, bh)


def actor_critic_fused(x, packed, *, block_b=1024):
    """Returns (trunk (B,64), action_probs (B,2), state_value (B,1))."""
    B = x.shape[0]
    TB = B if B <= block_b else block_b        # full dim or multiple-of-8 tile
    grid = (pl.cdiv(B, TB),)

    const = lambda shape: pl.BlockSpec(shape, lambda i: (0,) * len(shape))
    out = pl.pallas_call(
        _fused_kernel,
        out_shape=jax.ShapeDtypeStruct((B, OUT_W), jnp.float32),
        grid=grid,
        in_specs=[
            pl.BlockSpec((TB, N_INPUTS), lambda i: (i, 0)),
            const((N_INPUTS, H1)), const((1, H1)),
            const((H1, H2)),       const((1, H2)),
            const((H2, H3)),       const((1, H3)),
            const((H3, OUT_W)),    const((1, OUT_W)),
        ],
        out_specs=pl.BlockSpec((TB, OUT_W), lambda i: (i, 0)),
        compiler_params=pltpu.CompilerParams(
            dimension_semantics=("parallel",)),
    )(x.astype(jnp.float32), *packed)

    trunk = out[:, :TRUNK]
    probs = out[:, TRUNK:_VAL_OFF]
    value = out[:, _VAL_OFF:_VAL_OFF + 1]
    return trunk, probs, value


def actor_critic_forward(x, packed, **kw):
    """Equivalent of ActorCritic.forward(x): the ReLU trunk only."""
    trunk, _, _ = actor_critic_fused(x, packed, **kw)
    return trunk


def get_action_probs(x, packed, **kw):
    """Equivalent of ActorCritic.get_action_probs(x)."""
    _, probs, _ = actor_critic_fused(x, packed, **kw)
    return probs


def get_state_value(x, packed, **kw):
    """Equivalent of ActorCritic.get_state_value(x)."""
    _, _, value = actor_critic_fused(x, packed, **kw)
    return value


def evaluate_actions(x, packed, **kw):
    """Equivalent of ActorCritic.evaluate_actions(x)."""
    _, probs, value = actor_critic_fused(x, packed, **kw)
    return probs, value


def init_params(key):
    """nn.Linear default init U(-1/sqrt(fan_in), 1/sqrt(fan_in)); weights pre-transposed."""
    def linear(k, fan_in, fan_out):
        kw, kb = jax.random.split(k)
        bound = 1.0 / jnp.sqrt(fan_in)
        w = jax.random.uniform(kw, (fan_in, fan_out), jnp.float32, -bound, bound)
        b = jax.random.uniform(kb, (1, fan_out), jnp.float32, -bound, bound)
        return w, b

    k1, k2, k3, k4, k5 = jax.random.split(key, 5)
    w1, b1 = linear(k1, N_INPUTS, H1)
    w2, b2 = linear(k2, H1, H2)
    w3, b3 = linear(k3, H2, H3)
    wa, ba = linear(k4, H3, N_ACTIONS)
    wc, bc = linear(k5, H3, 1)
    return (w1, b1, w2, b2, w3, b3, wa, ba, wc, bc)


def _reference(x, params):
    """Pure f32 reference of forward + both heads + softmax."""
    w1, b1, w2, b2, w3, b3, wa, ba, wc, bc = params
    h = jnp.maximum(x @ w1 + b1, 0.0)
    h = jnp.maximum(h @ w2 + b2, 0.0)
    h = jnp.maximum(h @ w3 + b3, 0.0)
    probs = jax.nn.softmax(h @ wa + ba, axis=-1)
    value = h @ wc + bc
    return h, probs, value


if __name__ == "__main__":
    key = jax.random.PRNGKey(0)
    pkey, xkey = jax.random.split(key)
    params = init_params(pkey)
    packed = prepare_params(params)

    B = 8
    x = jax.random.normal(xkey, (B, N_INPUTS), jnp.float32)

    trunk, probs, value = actor_critic_fused(x, packed)
    jax.block_until_ready((trunk, probs, value))

    ref_trunk, ref_probs, ref_value = _reference(x, params)
    assert trunk.shape == (B, H3)
    assert probs.shape == (B, N_ACTIONS)
    assert value.shape == (B, 1)
    # bf16 matmul inputs in layers 2/3 -> loosened tolerance vs f32 reference
    assert jnp.allclose(trunk, ref_trunk, atol=3e-2, rtol=3e-2)
    assert jnp.allclose(probs, ref_probs, atol=3e-2, rtol=3e-2)
    assert jnp.allclose(value, ref_value, atol=3e-2, rtol=3e-2)
    # exact f32 softmax normalization -> rows sum to 1 to float rounding
    assert jnp.allclose(probs.sum(axis=-1), 1.0, atol=1e-4)

    print("KERNEL_OK")
</pallas_src>

<mosaic_0001>
module attributes {stable_mosaic.version = 11 : i64} {
  func.func @_fused_kernel(%arg0: i32, %arg1: memref<8x4xf32, #tpu.memory_space<vmem>>, %arg2: memref<4x64xf32, #tpu.memory_space<vmem>>, %arg3: memref<1x64xf32, #tpu.memory_space<vmem>>, %arg4: memref<64x128xbf16, #tpu.memory_space<vmem>>, %arg5: memref<1x128xf32, #tpu.memory_space<vmem>>, %arg6: memref<128x64xbf16, #tpu.memory_space<vmem>>, %arg7: memref<1x64xf32, #tpu.memory_space<vmem>>, %arg8: memref<64x128xf32, #tpu.memory_space<vmem>>, %arg9: memref<1x128xf32, #tpu.memory_space<vmem>>, %arg10: memref<8x128xf32, #tpu.memory_space<vmem>>) attributes {dimension_semantics = [#tpu.dimension_semantics<parallel>], iteration_bounds = array<i64: 1>, scalar_prefetch = 0 : i64, scratch_operands = 0 : i64, tpu.core_type = #tpu.core_type<tc>, window_params = [{transform_indices = @transform_0, window_bounds = array<i64: 8, 4>}, {pipeline_mode = #tpu.pipeline_mode<synchronous>, transform_indices = @transform_1, window_bounds = array<i64: 4, 64>}, {pipeline_mode = #tpu.pipeline_mode<synchronous>, transform_indices = @transform_2, window_bounds = array<i64: 1, 64>}, {pipeline_mode = #tpu.pipeline_mode<synchronous>, transform_indices = @transform_3, window_bounds = array<i64: 64, 128>}, {pipeline_mode = #tpu.pipeline_mode<synchronous>, transform_indices = @transform_4, window_bounds = array<i64: 1, 128>}, {pipeline_mode = #tpu.pipeline_mode<synchronous>, transform_indices = @transform_5, window_bounds = array<i64: 128, 64>}, {pipeline_mode = #tpu.pipeline_mode<synchronous>, transform_indices = @transform_6, window_bounds = array<i64: 1, 64>}, {pipeline_mode = #tpu.pipeline_mode<synchronous>, transform_indices = @transform_7, window_bounds = array<i64: 64, 128>}, {pipeline_mode = #tpu.pipeline_mode<synchronous>, transform_indices = @transform_8, window_bounds = array<i64: 1, 128>}, {transform_indices = @transform_9, window_bounds = array<i64: 8, 128>}]} {
    %c0 = arith.constant 0 : index
    %c0_0 = arith.constant 0 : index
    %0 = vector.load %arg1[%c0, %c0_0] : memref<8x4xf32, #tpu.memory_space<vmem>>, vector<8x4xf32>
    %c0_1 = arith.constant 0 : index
    %c0_2 = arith.constant 0 : index
    %1 = vector.load %arg2[%c0_1, %c0_2] : memref<4x64xf32, #tpu.memory_space<vmem>>, vector<4x64xf32>
    %cst = arith.constant dense<0.000000e+00> : vector<8x64xf32>
    %2 = tpu.matmul %0, %1, %cst {dimension_numbers = #tpu.dot_dimension_numbers<[1], [0], [0], [1], [0, 0, 1, 1], [], []>} : vector<8x4xf32>, vector<4x64xf32>, vector<8x64xf32> -> vector<8x64xf32>
    %c0_3 = arith.constant 0 : index
    %c0_4 = arith.constant 0 : index
    %3 = vector.load %arg3[%c0_3, %c0_4] : memref<1x64xf32, #tpu.memory_space<vmem>>, vector<1x64xf32>
    %4 = vector.broadcast %3 : vector<1x64xf32> to vector<8x64xf32>
    %5 = arith.addf %2, %4 : vector<8x64xf32>
    %cst_5 = arith.constant 0.000000e+00 : f32
    %6 = vector.broadcast %cst_5 : f32 to vector<8x64xf32>
    %7 = arith.maximumf %5, %6 : vector<8x64xf32>
    %8 = arith.truncf %7 : vector<8x64xf32> to vector<8x64xbf16>
    %c0_6 = arith.constant 0 : index
    %c0_7 = arith.constant 0 : index
    %9 = vector.load %arg4[%c0_6, %c0_7] : memref<64x128xbf16, #tpu.memory_space<vmem>>, vector<64x128xbf16>
    %cst_8 = arith.constant dense<0.000000e+00> : vector<8x128xf32>
    %10 = tpu.matmul %8, %9, %cst_8 {dimension_numbers = #tpu.dot_dimension_numbers<[1], [0], [0], [1], [0, 0, 1, 1], [], []>} : vector<8x64xbf16>, vector<64x128xbf16>, vector<8x128xf32> -> vector<8x128xf32>
    %c0_9 = arith.constant 0 : index
    %c0_10 = arith.constant 0 : index
    %11 = vector.load %arg5[%c0_9, %c0_10] : memref<1x128xf32, #tpu.memory_space<vmem>>, vector<1x128xf32>
    %12 = vector.broadcast %11 : vector<1x128xf32> to vector<8x128xf32>
    %13 = arith.addf %10, %12 : vector<8x128xf32>
    %cst_11 = arith.constant 0.000000e+00 : f32
    %14 = vector.broadcast %cst_11 : f32 to vector<8x128xf32>
    %15 = arith.maximumf %13, %14 : vector<8x128xf32>
    %16 = arith.truncf %15 : vector<8x128xf32> to vector<8x128xbf16>
    %c0_12 = arith.constant 0 : index
    %c0_13 = arith.constant 0 : index
    %17 = vector.load %arg6[%c0_12, %c0_13] : memref<128x64xbf16, #tpu.memory_space<vmem>>, vector<128x64xbf16>
    %cst_14 = arith.constant dense<0.000000e+00> : vector<8x64xf32>
    %18 = tpu.matmul %16, %17, %cst_14 {dimension_numbers = #tpu.dot_dimension_numbers<[1], [0], [0], [1], [0, 0, 1, 1], [], []>} : vector<8x128xbf16>, vector<128x64xbf16>, vector<8x64xf32> -> vector<8x64xf32>
    %c0_15 = arith.constant 0 : index
    %c0_16 = arith.constant 0 : index
    %19 = vector.load %arg7[%c0_15, %c0_16] : memref<1x64xf32, #tpu.memory_space<vmem>>, vector<1x64xf32>
    %20 = vector.broadcast %19 : vector<1x64xf32> to vector<8x64xf32>
    %21 = arith.addf %18, %20 : vector<8x64xf32>
    %cst_17 = arith.constant 0.000000e+00 : f32
    %22 = vector.broadcast %cst_17 : f32 to vector<8x64xf32>
    %23 = arith.maximumf %21, %22 : vector<8x64xf32>
    %c0_18 = arith.constant 0 : index
    %c0_19 = arith.constant 0 : index
    %24 = vector.load %arg8[%c0_18, %c0_19] : memref<64x128xf32, #tpu.memory_space<vmem>>, vector<64x128xf32>
    %cst_20 = arith.constant dense<0.000000e+00> : vector<8x128xf32>
    %25 = tpu.matmul %23, %24, %cst_20 {dimension_numbers = #tpu.dot_dimension_numbers<[1], [0], [0], [1], [0, 0, 1, 1], [], []>} : vector<8x64xf32>, vector<64x128xf32>, vector<8x128xf32> -> vector<8x128xf32>
    %c0_21 = arith.constant 0 : index
    %c0_22 = arith.constant 0 : index
    %26 = vector.load %arg9[%c0_21, %c0_22] : memref<1x128xf32, #tpu.memory_space<vmem>>, vector<1x128xf32>
    %27 = vector.broadcast %26 : vector<1x128xf32> to vector<8x128xf32>
    %28 = arith.addf %25, %27 : vector<8x128xf32>
    %29 = tpu.iota {dimensions = array<i32: 1>} : vector<8x128xi32>
    %c64_i32 = arith.constant 64 : i32
    %30 = vector.broadcast %c64_i32 : i32 to vector<8x128xi32>
    %31 = arith.cmpi sge, %29, %30 : vector<8x128xi32>
    %c66_i32 = arith.constant 66 : i32
    %32 = vector.broadcast %c66_i32 : i32 to vector<8x128xi32>
    %33 = arith.cmpi slt, %29, %32 : vector<8x128xi32>
    %34 = arith.andi %31, %33 : vector<8x128xi1>
    %cst_23 = arith.constant -1.000000e+30 : f32
    %35 = vector.broadcast %cst_23 : f32 to vector<8x128xf32>
    %36 = arith.select %34, %28, %35 : vector<8x128xi1>, vector<8x128xf32>
    %cst_24 = arith.constant dense<0xFF800000> : vector<8xf32>
    %37 = vector.multi_reduction <maximumf>, %36, %cst_24 [1] : vector<8x128xf32> to vector<8xf32>
    %38 = vector.shape_cast %37 : vector<8xf32> to vector<8x1xf32>
    %39 = vector.broadcast %38 : vector<8x1xf32> to vector<8x128xf32>
    %40 = arith.subf %36, %39 : vector<8x128xf32>
    %41 = math.exp %40 : vector<8x128xf32>
    %cst_25 = arith.constant 0.000000e+00 : f32
    %42 = vector.broadcast %cst_25 : f32 to vector<8x128xf32>
    %43 = arith.select %34, %41, %42 : vector<8x128xi1>, vector<8x128xf32>
    %cst_26 = arith.constant dense<0.000000e+00> : vector<8xf32>
    %44 = vector.multi_reduction <add>, %43, %cst_26 [1] : vector<8x128xf32> to vector<8xf32>
    %45 = vector.shape_cast %44 : vector<8xf32> to vector<8x1xf32>
    %46 = vector.broadcast %45 : vector<8x1xf32> to vector<8x128xf32>
    %47 = arith.divf %43, %46 : vector<8x128xf32>
    %48 = arith.select %34, %47, %28 : vector<8x128xi1>, vector<8x128xf32>
    %c0_27 = arith.constant 0 : index
    %c0_28 = arith.constant 0 : index
    %49 = vector.load %arg10[%c0_27, %c0_28] : memref<8x128xf32, #tpu.memory_space<vmem>>, vector<8x128xf32>
    tpu.vector_store %arg10[%c0_27, %c0_28], %48 {strides = array<i32>} : memref<8x128xf32, #tpu.memory_space<vmem>>, vector<8x128xf32>,
    return
  }
  func.func @transform_0(%arg0: i32) -> (i32, i32) {
    %c0_i32 = arith.constant 0 : i32
    %c0_i32_0 = arith.constant 0 : i32
    return %arg0, %c0_i32 : i32, i32
  }
  func.func @transform_1(%arg0: i32) -> (i32, i32) {
    %c0_i32 = arith.constant 0 : i32
    %c0_i32_0 = arith.constant 0 : i32
    %c0_i32_1 = arith.constant 0 : i32
    return %c0_i32, %c0_i32_0 : i32, i32
  }
  func.func @transform_2(%arg0: i32) -> (i32, i32) {
    %c0_i32 = arith.constant 0 : i32
    %c0_i32_0 = arith.constant 0 : i32
    %c0_i32_1 = arith.constant 0 : i32
    return %c0_i32, %c0_i32_0 : i32, i32
  }
  func.func @transform_3(%arg0: i32) -> (i32, i32) {
    %c0_i32 = arith.constant 0 : i32
    %c0_i32_0 = arith.constant 0 : i32
    %c0_i32_1 = arith.constant 0 : i32
    return %c0_i32, %c0_i32_0 : i32, i32
  }
  func.func @transform_4(%arg0: i32) -> (i32, i32) {
    %c0_i32 = arith.constant 0 : i32
    %c0_i32_0 = arith.constant 0 : i32
    %c0_i32_1 = arith.constant 0 : i32
    return %c0_i32, %c0_i32_0 : i32, i32
  }
  func.func @transform_5(%arg0: i32) -> (i32, i32) {
    %c0_i32 = arith.constant 0 : i32
    %c0_i32_0 = arith.constant 0 : i32
    %c0_i32_1 = arith.constant 0 : i32
    return %c0_i32, %c0_i32_0 : i32, i32
  }
  func.func @transform_6(%arg0: i32) -> (i32, i32) {
    %c0_i32 = arith.constant 0 : i32
    %c0_i32_0 = arith.constant 0 : i32
    %c0_i32_1 = arith.constant 0 : i32
    return %c0_i32, %c0_i32_0 : i32, i32
  }
  func.func @transform_7(%arg0: i32) -> (i32, i32) {
    %c0_i32 = arith.constant 0 : i32
    %c0_i32_0 = arith.constant 0 : i32
    %c0_i32_1 = arith.constant 0 : i32
    return %c0_i32, %c0_i32_0 : i32, i32
  }
  func.func @transform_8(%arg0: i32) -> (i32, i32) {
    %c0_i32 = arith.constant 0 : i32
    %c0_i32_0 = arith.constant 0 : i32
    %c0_i32_1 = arith.constant 0 : i32
    return %c0_i32, %c0_i32_0 : i32, i32
  }
  func.func @transform_9(%arg0: i32) -> (i32, i32) {
    %c0_i32 = arith.constant 0 : i32
    %c0_i32_0 = arith.constant 0 : i32
    return %arg0, %c0_i32 : i32, i32
  }
}

</mosaic_0001>

<bundles_post_ra>
// kernel: tpu_custom_call.1
= control target key start
LH: loop header
LB: loop body
LE: loop exit
PB: predicated region body
PF: predicated region fallthrough
CT: control target
= control target key end

     0   :  { %vm44_vm0 = vcmask 1043456   ;;  %vm40_vm1 = vcmask 31744   ;;  %s532_s0 = inlined_call_operand.vmem [shape: f32[8,4], index: 0, kind: input, shape index: {}]   ;;  %s533_s1 = inlined_call_operand.vmem [shape: f32[4,64], index: 1, kind: input, shape index: {}]   ;;  %s534_s2 = inlined_call_operand.vmem [shape: f32[1,64], index: 2, kind: input, shape index: {}]   ;;  %s535_s3 = inlined_call_operand.vmem [shape: bf16[64,128], index: 3, kind: input, shape index: {}]   ;;  %s536_s4 = inlined_call_operand.vmem [shape: f32[1,128], index: 4, kind: input, shape index: {}]   ;;  %s537_s5 = inlined_call_operand.vmem [shape: bf16[128,64], index: 5, kind: input, shape index: {}]   ;;  %s538_s6 = inlined_call_operand.vmem [shape: f32[1,64], index: 6, kind: input, shape index: {}]   ;;  %s539_s7 = inlined_call_operand.vmem [shape: f32[64,128], index: 7, kind: input, shape index: {}]   ;;  %s540_s8 = inlined_call_operand.vmem [shape: f32[1,128], index: 8, kind: input, shape index: {}]   ;;  %s541_s9 = inlined_call_operand.hbm [shape: f32[8,128], index: 9, kind: output, shape index: {}]  }
   0x1   :  { %v35_v0 = vld [vmem:[%s533_s1] sm:$0xf]  ;;  %v344_v2 = vld [vmem:[%s535_s3 + $0x18] sm:$0xff]  ;;  %v343_v3 = vld [vmem:[%s535_s3 + $0x10] sm:$0xff] }
   0x2   :  { %v34_v1 = vld [vmem:[%s532_s0] sm:$0xff]  ;;  %289 = vmatpush.msk.msra.mxu0 %vm44_vm0, %v35_v0  ;;  %114 = vmatpush.bf16.msra.mxu1 %v344_v2 }
   0x3   :  { %290 = vmatmul.msk.f32.vlgmr.msra.gmra.mxu0 %vm40_vm1, %v34_v1 }
   0x4   :  { %14 = vsyncpa [#allocation3], 0  ;;  %v342_v4 = vld [vmem:[%s535_s3 + $0x8] sm:$0xff]  ;;  %v341_v5 = vld [vmem:[%s535_s3] sm:$0xff]  ;;  %vm106_vm2 = vcmask 523264   ;;  %v242_v38 = vlaneseq  ;;  %s280_s11 = sshll.u32 %s541_s9, 4  ;;  %s281_s11 = int_to_ptr.hbm [resolvable:$true] %s280_s11 }
   0x5   :  { %v352_v6 = vld [vmem:[%s537_s5 + $0x38] sm:$0xff]  ;;  %v351_v7 = vld [vmem:[%s537_s5 + $0x30] sm:$0xff]  ;;  %v350_v8 = vld [vmem:[%s537_s5 + $0x28] sm:$0xff] }
   0x6   :  { %115 = vmatpush.bf16.msra.mxu1 %v343_v3  ;;  %193 = vmatpush.bf16.msra.mxu2 %v352_v6  ;;  %v349_v9 = vld [vmem:[%s537_s5 + $0x20] sm:$0xff]  ;;  %v348_v10 = vld [vmem:[%s537_s5 + $0x18] sm:$0xff]  ;;  %v347_v11 = vld [vmem:[%s537_s5 + $0x10] sm:$0xff]  ;;  %v243_v39 = vand.u32 127, %v242_v38 }
   0x7   :  { %v354_v12 = vld [vmem:[%s534_s2] ss:$0 sm:$0xff]  ;;  %v346_v17 = vld [vmem:[%s537_s5 + $0x8] sm:$0xff]  ;;  %v214_v19 = vld [vmem:[%s539_s7 + $0x38] sm:$0xff] }
   0x8   :  { %v345_v18 = vld [vmem:[%s537_s5] sm:$0xff]  ;;  %v213_v20 = vld [vmem:[%s539_s7 + $0x30] sm:$0xff]  ;;  %230 = vmatpush.msra.mxu3 %v214_v19  ;;  %v212_v21 = vld [vmem:[%s539_s7 + $0x28] sm:$0xff]  ;;  %vm244_vm3 = vcmp.ge.s32.totalorder %v243_v39, 64  ;;  %vm245_vm4 = vcmp.lt.s32.totalorder %v243_v39, 66 }
   0x9   :  { %v211_v22 = vld [vmem:[%s539_s7 + $0x20] sm:$0xff]  ;;  %v210_v23 = vld [vmem:[%s539_s7 + $0x18] sm:$0xff]  ;;  %v209_v30 = vld [vmem:[%s539_s7 + $0x10] sm:$0xff] }
   0xa   :  { %116 = vmatpush.bf16.msra.mxu1 %v342_v4  ;;  %194 = vmatpush.bf16.msra.mxu2 %v351_v7  ;;  %v355_v24 = vld [vmem:[%s536_s4] ss:$0 sm:$0xff]  ;;  %v208_v31 = vld [vmem:[%s539_s7 + $0x8] sm:$0xff]  ;;  %vm519_vm5 = vmand %vm244_vm3, %vm245_vm4 }
   0xb   :  { %231 = vmatpush.msra.mxu3 %v213_v20  ;;  %v207_v32 = vld [vmem:[%s539_s7] sm:$0xff] }
   0xc   :  { %v356_v33 = vld [vmem:[%s538_s6] ss:$0 sm:$0xff]  ;;  %s388_s6 = smov [#allocation2]  }
   0xd   :  { %232 = vmatpush.msra.mxu3 %v212_v21  ;;  %v357_v40 = vld [vmem:[%s540_s8] ss:$0 sm:$0xff]  ;;  %s278_s7 = sshll.u32 %s388_s6, 4  ;;  %s279_s7 = int_to_ptr.vmem [resolvable:$true] %s278_s7 }
   0xe   :  { %117 = vmatpush.bf16.msra.mxu1 %v341_v5  ;;  %195 = vmatpush.bf16.msra.mxu2 %v350_v8 }
   0xf   :  { %233 = vmatpush.msra.mxu3 %v211_v22 }
  0x11   :  { %234 = vmatpush.msra.mxu3 %v210_v23 }
  0x12   :  { %196 = vmatpush.bf16.msra.mxu2 %v349_v9 }
  0x13   :  { %235 = vmatpush.msra.mxu3 %v209_v30 }
  0x15   :  { %236 = vmatpush.msra.mxu3 %v208_v31 }
  0x16   :  { %197 = vmatpush.bf16.msra.mxu2 %v348_v10 }
  0x17   :  { %237 = vmatpush.msra.mxu3 %v207_v32 }
  0x1a   :  { %198 = vmatpush.bf16.msra.mxu2 %v347_v11 }
  0x1e   :  { %199 = vmatpush.bf16.msra.mxu2 %v346_v17 }
  0x22   :  { %200 = vmatpush.bf16.msra.mxu2 %v345_v18 }
  0x80   :  { %v65_v13 = vpop.f32.mrf.mxu0 }
  0x81   :  { %v66_v14 = vadd.f32 %v354_v12, %v65_v13 }
  0x83   :  { %v68_v15 = vmax.f32 %v66_v14, 0.0 }
  0x85   :  { %v69_v16 = vpack.c.bf16 %v68_v15, %v68_v15 }
  0x87   :  { %307 = vmatmul.msk.bf16.vlgmr.msra.gmra.mxu1 %vm106_vm2, %v69_v16 }
 0x104   :  { %v119_v25 = vpop.f32.mrf.mxu1 }
 0x105   :  { %v120_v26 = vadd.f32 %v355_v24, %v119_v25 }
 0x107   :  { %v123_v27 = vmax.f32 %v120_v26, 0.0 }
 0x109   :  { %v124_v28 = vpack.c.bf16 %v123_v27, %v123_v27 }
 0x10b   :  { %201 = vmatmul.bf16.vlgmr.msra.gmra.mxu2 %v124_v28 }
 0x10c   :  { %v121_v29 = vpop.f32.mrf.mxu1 }
 0x18e   :  { %v202_v34 = vpop.f32.mrf.mxu2 }
 0x18f   :  { %v203_v35 = vadd.f32 %v356_v33, %v202_v34 }
 0x191   :  { %v206_v36 = vmax.f32 %v203_v35, 0.0 }
 0x193   :  { %340 = vmatmul.msk.f32.vlgmr.msra.gmra.mxu3 %vm106_vm2, %v206_v36 }
 0x196   :  { %v204_v37 = vpop.f32.mrf.mxu2 }
 0x216   :  { %v239_v41 = vpop.f32.mrf.mxu3 }
 0x217   :  { %v240_v43 = vadd.f32 %v357_v40, %v239_v41 }
 0x219   :  { %v247_v44 = vsel %vm519_vm5, %v240_v43, -1e+30 }
 0x21a   :  { %248 = vmax.xlane.f32.xlu0 %v247_v44 }
 0x28d   :  { %v249_v45 = vpop.xlane.xlu0 %248 }
 0x28e   :  { %v250_v46 = vsub.f32 %v247_v44, %v249_v45 }
 0x290   :  { %v251_v47 = vmul.f32 1.442695, %v250_v46 }
 0x292   :  { %358 = vpow2.f32 %v251_v47 }
 0x298   :  { %v359_v48 = vpop.eup %358 }
 0x299   :  { %v253_v49 = vsel %vm519_vm5, %v359_v48, 0.0 }
 0x29a   :  { %254 = vadd.xlane.f32.xlu0 %v253_v49 }
 0x30d   :  { %v255_v50 = vpop.xlane.xlu0 %254 }
 0x30e   :  { %360 = vrcp.f32 %v255_v50  ;;  %v267_v54 = vand.u32 2147483648, %v255_v50  ;;  %v265_v56 = vand.u32 2147483647, %v255_v50  ;;  %vm261_vm7 = vweird.f32 %v255_v50 }
 0x310   :  { %v268_v58 = vor.u32 1.1754944e-38, %v267_v54  ;;  %vm266_vm9 = vcmp.eq.f32.partialorder %v265_v56, 8.507059e+37 }
 0x314   :  { %v361_v51 = vpop.eup %360 }
 0x315   :  { %v257_v52 = vmul.f32 %v361_v51, %v255_v50  ;;  %vm262_vm6 = vweird.f32 %v361_v51 }
 0x316   :  { %vm263_vm8 = vmor %vm261_vm7, %vm262_vm6 }
 0x317   :  { %v258_v53 = vsub.f32 1.0, %v257_v52 }
 0x319   :  { %v259_v55 = vmul.f32 %v361_v51, %v258_v53 }
 0x31b   :  { %v260_v57 = vadd.f32 %v361_v51, %v259_v55 }
 0x31d   :  { %v264_v59 = vsel %vm263_vm8, %v361_v51, %v260_v57 }
 0x31e   :  { %v269_v60 = vsel %vm266_vm9, %v268_v58, %v264_v59 }
 0x31f   :  { %v270_v61 = vmul.f32 %v269_v60, %v253_v49 }
 0x321   :  { %v271_v62 = vsel %vm519_vm5, %v270_v61, %v240_v43 }
 0x322   :  { %272 = vst [vmem:[#allocation2] sm:$0xff] %v271_v62 }
 0x323   :  { %283 = dma.vmem_to_hbm [thread:$0]  %s279_s7, 128, %s281_s11, [#allocation3]  }
 0x324   :  { %386 = dma.done.wait [#allocation3], 128  }
 0x325   :  { %387 = vsyncadd [#allocation3], 4294967168 }
 0x326   :  { %288 = vsyncpa [#allocation3], 1 }

</bundles_post_ra>
